<compile_context>
chip_gen: v6e
topology: v6e:2x2x1
jax: 0.10.0
libtpu: 0.0.40
codegen_flags: <defaults>
</compile_context>

<pallas_src>
import jax
import jax.numpy as jnp
from jax.experimental import pallas as pl
from jax.experimental.pallas import tpu as pltpu

LANE = 128       # TPU lane width (used only for the tiny internal hidden dims)
MAX_TILE_B = 512  # batch rows per grid step


def _round_up(n, m):
    return ((n + m - 1) // m) * m


def _pad2d(a, rows, cols):
    """Zero-pad a 2D array up to (rows, cols)."""
    r, c = a.shape
    return jnp.pad(a, ((0, rows - r), (0, cols - c)))


def mlp_kernel(x_ref, w1_ref, b1_ref, w2_ref, b2_ref, w3_ref, b3_ref, o_ref):
    x = x_ref[...]                                       # (tile_b, in)  f32
    # fc1 + ReLU  (K=in_features; Mosaic pads the MXU pass internally)
    h1 = jnp.dot(x, w1_ref[...], preferred_element_type=jnp.float32) + b1_ref[...]
    h1 = jnp.maximum(h1, 0.0)                            # (tile_b, 128) f32
    # fc2 + ReLU  (padded hidden lanes are exactly zero -> contribute nothing)
    h2 = jnp.dot(h1, w2_ref[...], preferred_element_type=jnp.float32) + b2_ref[...]
    h2 = jnp.maximum(h2, 0.0)                            # (tile_b, 128) f32
    # out: w3 keeps its real 3 columns, so the store is lane-narrow but tiny
    o_ref[...] = (
        jnp.dot(h2, w3_ref[...], preferred_element_type=jnp.float32) + b3_ref[...]
    ).astype(o_ref.dtype)                                # (tile_b, out)


def prepare_params(params):
    """One-time weight prep (hoisted out of the forward path).

    Hidden dims (8, 9) are zero-padded to 128 lanes so the two internal
    activations are clean full-vreg tiles; the input dim (4) and output dim (3)
    stay unpadded so HBM traffic for x / out is not inflated. Zero-padded
    weight rows/cols + zero bias padding keep the math exact for this
    Linear->ReLU stack.
    """
    w1, b1 = params["w1"], params["b1"]
    w2, b2 = params["w2"], params["b2"]
    w3, b3 = params["w3"], params["b3"]
    in_f, h1_f = w1.shape
    _, h2_f = w2.shape
    _, out_f = w3.shape
    h1_p = _round_up(h1_f, LANE)
    h2_p = _round_up(h2_f, LANE)
    return {
        "w1": _pad2d(w1, in_f, h1_p).astype(jnp.float32),   # (4,   128)
        "b1": _pad2d(b1, 1, h1_p).astype(jnp.float32),       # (1,   128)
        "w2": _pad2d(w2, h1_p, h2_p).astype(jnp.float32),    # (128, 128)
        "b2": _pad2d(b2, 1, h2_p).astype(jnp.float32),       # (1,   128)
        "w3": _pad2d(w3, h2_p, out_f).astype(jnp.float32),   # (128, 3)
        "b3": b3.astype(jnp.float32),                        # (1,   3)
    }


@jax.jit
def mlp_forward(x, prepped):
    """x: (B, in_features) f32. prepped: output of prepare_params()."""
    B, in_features = x.shape
    out_features = prepped["w3"].shape[1]

    # ---- batch tiling -------------------------------------------------------
    # >= 2 grid steps once B is non-trivial so "parallel" splits work across
    # both v7x TensorCores; pad only to a multiple of 8 per tile (no full-tile
    # rounding waste).
    n_tiles = max(pl.cdiv(B, MAX_TILE_B), 2) if B >= 16 else 1
    tile_b = _round_up(pl.cdiv(B, n_tiles), 8)
    b_pad = tile_b * n_tiles

    x_p = x if b_pad == B else jnp.pad(x, ((0, b_pad - B), (0, 0)))

    # ---- weight-stationary batch grid ---------------------------------------
    grid = (n_tiles,)
    x_spec = pl.BlockSpec((tile_b, in_features), lambda i: (i, 0))
    o_spec = pl.BlockSpec((tile_b, out_features), lambda i: (i, 0))
    stationary = lambda a: pl.BlockSpec(a.shape, lambda i: (0, 0))

    out_padded = pl.pallas_call(
        mlp_kernel,
        out_shape=jax.ShapeDtypeStruct((b_pad, out_features), jnp.float32),
        grid=grid,
        in_specs=[
            x_spec,
            stationary(prepped["w1"]), stationary(prepped["b1"]),
            stationary(prepped["w2"]), stationary(prepped["b2"]),
            stationary(prepped["w3"]), stationary(prepped["b3"]),
        ],
        out_specs=o_spec,
        compiler_params=pltpu.CompilerParams(
            dimension_semantics=("parallel",),  # shard batch across v7x's 2 TCs
        ),
    )(x_p, prepped["w1"], prepped["b1"], prepped["w2"], prepped["b2"],
      prepped["w3"], prepped["b3"])

    # only a contiguous row slice remains (padded rows carry bias garbage)
    return out_padded if b_pad == B else out_padded[:B]


def init_params(key, in_features=4, h1=8, h2=9, out_features=3):
    """Deterministic init mirroring nn.Linear's U(-1/sqrt(fan_in), 1/sqrt(fan_in)).
    Weights are stored transposed as (fan_in, fan_out)."""
    ks = jax.random.split(key, 6)

    def lin(kw, kb, fan_in, fan_out):
        bound = 1.0 / jnp.sqrt(fan_in)
        w = jax.random.uniform(kw, (fan_in, fan_out), jnp.float32, -bound, bound)
        b = jax.random.uniform(kb, (1, fan_out), jnp.float32, -bound, bound)
        return w, b

    w1, b1 = lin(ks[0], ks[1], in_features, h1)
    w2, b2 = lin(ks[2], ks[3], h1, h2)
    w3, b3 = lin(ks[4], ks[5], h2, out_features)
    return {"w1": w1, "b1": b1, "w2": w2, "b2": b2, "w3": w3, "b3": b3}


def mlp_reference(x, p):
    h = jnp.maximum(x @ p["w1"] + p["b1"], 0.0)
    h = jnp.maximum(h @ p["w2"] + p["b2"], 0.0)
    return h @ p["w3"] + p["b3"]


if __name__ == "__main__":
    key = jax.random.PRNGKey(0)
    k_x, k_x2, k_p = jax.random.split(key, 3)

    params = init_params(k_p, in_features=4, h1=8, h2=9, out_features=3)
    prepped = prepare_params(params)   # one-time prep, not in the forward path

    # small batch: single grid step
    x = jax.random.normal(k_x, (8, 4), jnp.float32)
    out = jax.block_until_ready(mlp_forward(x, prepped))
    ref = mlp_reference(x, params)
    assert out.shape == (8, 3), out.shape
    assert jnp.allclose(out, ref, atol=1e-5, rtol=1e-5), "mismatch vs reference (B=8)"

    # batch that exercises row padding + a 2-step grid (both TCs on v7x)
    x2 = jax.random.normal(k_x2, (67, 4), jnp.float32)
    out2 = jax.block_until_ready(mlp_forward(x2, prepped))
    ref2 = mlp_reference(x2, params)
    assert out2.shape == (67, 3), out2.shape
    assert jnp.allclose(out2, ref2, atol=1e-5, rtol=1e-5), "mismatch vs reference (B=67)"

    print("KERNEL_OK")
</pallas_src>

<mosaic_0001>
module attributes {stable_mosaic.version = 11 : i64} {
  func.func @mlp_kernel(%arg0: i32, %arg1: memref<8x4xf32, #tpu.memory_space<vmem>>, %arg2: memref<4x128xf32, #tpu.memory_space<vmem>>, %arg3: memref<1x128xf32, #tpu.memory_space<vmem>>, %arg4: memref<128x128xf32, #tpu.memory_space<vmem>>, %arg5: memref<1x128xf32, #tpu.memory_space<vmem>>, %arg6: memref<128x3xf32, #tpu.memory_space<vmem>>, %arg7: memref<1x3xf32, #tpu.memory_space<vmem>>, %arg8: memref<8x3xf32, #tpu.memory_space<vmem>>) attributes {dimension_semantics = [#tpu.dimension_semantics<parallel>], iteration_bounds = array<i64: 1>, scalar_prefetch = 0 : i64, scratch_operands = 0 : i64, tpu.core_type = #tpu.core_type<tc>, window_params = [{transform_indices = @transform_0, window_bounds = array<i64: 8, 4>}, {pipeline_mode = #tpu.pipeline_mode<synchronous>, transform_indices = @transform_1, window_bounds = array<i64: 4, 128>}, {pipeline_mode = #tpu.pipeline_mode<synchronous>, transform_indices = @transform_2, window_bounds = array<i64: 1, 128>}, {pipeline_mode = #tpu.pipeline_mode<synchronous>, transform_indices = @transform_3, window_bounds = array<i64: 128, 128>}, {pipeline_mode = #tpu.pipeline_mode<synchronous>, transform_indices = @transform_4, window_bounds = array<i64: 1, 128>}, {pipeline_mode = #tpu.pipeline_mode<synchronous>, transform_indices = @transform_5, window_bounds = array<i64: 128, 3>}, {pipeline_mode = #tpu.pipeline_mode<synchronous>, transform_indices = @transform_6, window_bounds = array<i64: 1, 3>}, {transform_indices = @transform_7, window_bounds = array<i64: 8, 3>}]} {
    %c0 = arith.constant 0 : index
    %c0_0 = arith.constant 0 : index
    %0 = vector.load %arg1[%c0, %c0_0] : memref<8x4xf32, #tpu.memory_space<vmem>>, vector<8x4xf32>
    %c0_1 = arith.constant 0 : index
    %c0_2 = arith.constant 0 : index
    %1 = vector.load %arg2[%c0_1, %c0_2] : memref<4x128xf32, #tpu.memory_space<vmem>>, vector<4x128xf32>
    %cst = arith.constant dense<0.000000e+00> : vector<8x128xf32>
    %2 = tpu.matmul %0, %1, %cst {dimension_numbers = #tpu.dot_dimension_numbers<[1], [0], [0], [1], [0, 0, 1, 1], [], []>} : vector<8x4xf32>, vector<4x128xf32>, vector<8x128xf32> -> vector<8x128xf32>
    %c0_3 = arith.constant 0 : index
    %c0_4 = arith.constant 0 : index
    %3 = vector.load %arg3[%c0_3, %c0_4] : memref<1x128xf32, #tpu.memory_space<vmem>>, vector<1x128xf32>
    %4 = vector.broadcast %3 : vector<1x128xf32> to vector<8x128xf32>
    %5 = arith.addf %2, %4 : vector<8x128xf32>
    %cst_5 = arith.constant 0.000000e+00 : f32
    %6 = vector.broadcast %cst_5 : f32 to vector<8x128xf32>
    %7 = arith.maximumf %5, %6 : vector<8x128xf32>
    %c0_6 = arith.constant 0 : index
    %c0_7 = arith.constant 0 : index
    %8 = vector.load %arg4[%c0_6, %c0_7] : memref<128x128xf32, #tpu.memory_space<vmem>>, vector<128x128xf32>
    %cst_8 = arith.constant dense<0.000000e+00> : vector<8x128xf32>
    %9 = tpu.matmul %7, %8, %cst_8 {dimension_numbers = #tpu.dot_dimension_numbers<[1], [0], [0], [1], [0, 0, 1, 1], [], []>} : vector<8x128xf32>, vector<128x128xf32>, vector<8x128xf32> -> vector<8x128xf32>
    %c0_9 = arith.constant 0 : index
    %c0_10 = arith.constant 0 : index
    %10 = vector.load %arg5[%c0_9, %c0_10] : memref<1x128xf32, #tpu.memory_space<vmem>>, vector<1x128xf32>
    %11 = vector.broadcast %10 : vector<1x128xf32> to vector<8x128xf32>
    %12 = arith.addf %9, %11 : vector<8x128xf32>
    %cst_11 = arith.constant 0.000000e+00 : f32
    %13 = vector.broadcast %cst_11 : f32 to vector<8x128xf32>
    %14 = arith.maximumf %12, %13 : vector<8x128xf32>
    %c0_12 = arith.constant 0 : index
    %c0_13 = arith.constant 0 : index
    %15 = vector.load %arg6[%c0_12, %c0_13] : memref<128x3xf32, #tpu.memory_space<vmem>>, vector<128x3xf32>
    %cst_14 = arith.constant dense<0.000000e+00> : vector<8x3xf32>
    %16 = tpu.matmul %14, %15, %cst_14 {dimension_numbers = #tpu.dot_dimension_numbers<[1], [0], [0], [1], [0, 0, 1, 1], [], []>} : vector<8x128xf32>, vector<128x3xf32>, vector<8x3xf32> -> vector<8x3xf32>
    %c0_15 = arith.constant 0 : index
    %c0_16 = arith.constant 0 : index
    %17 = vector.load %arg7[%c0_15, %c0_16] : memref<1x3xf32, #tpu.memory_space<vmem>>, vector<1x3xf32>
    %18 = vector.broadcast %17 : vector<1x3xf32> to vector<8x3xf32>
    %19 = arith.addf %16, %18 : vector<8x3xf32>
    %c0_17 = arith.constant 0 : index
    %c0_18 = arith.constant 0 : index
    %20 = vector.load %arg8[%c0_17, %c0_18] : memref<8x3xf32, #tpu.memory_space<vmem>>, vector<8x3xf32>
    tpu.vector_store %arg8[%c0_17, %c0_18], %19 {strides = array<i32>} : memref<8x3xf32, #tpu.memory_space<vmem>>, vector<8x3xf32>,
    return
  }
  func.func @transform_0(%arg0: i32) -> (i32, i32) {
    %c0_i32 = arith.constant 0 : i32
    %c0_i32_0 = arith.constant 0 : i32
    return %arg0, %c0_i32 : i32, i32
  }
  func.func @transform_1(%arg0: i32) -> (i32, i32) {
    %c0_i32 = arith.constant 0 : i32
    %c0_i32_0 = arith.constant 0 : i32
    %c0_i32_1 = arith.constant 0 : i32
    return %c0_i32, %c0_i32_0 : i32, i32
  }
  func.func @transform_2(%arg0: i32) -> (i32, i32) {
    %c0_i32 = arith.constant 0 : i32
    %c0_i32_0 = arith.constant 0 : i32
    %c0_i32_1 = arith.constant 0 : i32
    return %c0_i32, %c0_i32_0 : i32, i32
  }
  func.func @transform_3(%arg0: i32) -> (i32, i32) {
    %c0_i32 = arith.constant 0 : i32
    %c0_i32_0 = arith.constant 0 : i32
    %c0_i32_1 = arith.constant 0 : i32
    return %c0_i32, %c0_i32_0 : i32, i32
  }
  func.func @transform_4(%arg0: i32) -> (i32, i32) {
    %c0_i32 = arith.constant 0 : i32
    %c0_i32_0 = arith.constant 0 : i32
    %c0_i32_1 = arith.constant 0 : i32
    return %c0_i32, %c0_i32_0 : i32, i32
  }
  func.func @transform_5(%arg0: i32) -> (i32, i32) {
    %c0_i32 = arith.constant 0 : i32
    %c0_i32_0 = arith.constant 0 : i32
    %c0_i32_1 = arith.constant 0 : i32
    return %c0_i32, %c0_i32_0 : i32, i32
  }
  func.func @transform_6(%arg0: i32) -> (i32, i32) {
    %c0_i32 = arith.constant 0 : i32
    %c0_i32_0 = arith.constant 0 : i32
    %c0_i32_1 = arith.constant 0 : i32
    return %c0_i32, %c0_i32_0 : i32, i32
  }
  func.func @transform_7(%arg0: i32) -> (i32, i32) {
    %c0_i32 = arith.constant 0 : i32
    %c0_i32_0 = arith.constant 0 : i32
    return %arg0, %c0_i32 : i32, i32
  }
}

</mosaic_0001>

<bundles_post_ra>
// kernel: mlp_forward.1
= control target key start
LH: loop header
LB: loop body
LE: loop exit
PB: predicated region body
PF: predicated region fallthrough
CT: control target
= control target key end

     0   :  { %vm39_vm0 = vcmask 1043456   ;;  %vm35_vm1 = vcmask 31744   ;;  %v425_v0 = vmov 0.0   ;;  %vm426_vm2 = vmmov 0   ;;  %s620_s1 = inlined_call_operand.vmem [shape: f32[4,128], index: 1, kind: input, shape index: {}]   ;;  %s621_s0 = inlined_call_operand.vmem [shape: f32[8,4], index: 0, kind: input, shape index: {}]   ;;  %s622_s3 = inlined_call_operand.vmem [shape: f32[128,128], index: 3, kind: input, shape index: {}]   ;;  %s623_s5 = inlined_call_operand.vmem [shape: f32[128,3], index: 5, kind: input, shape index: {}]   ;;  %s624_s2 = inlined_call_operand.vmem [shape: f32[1,128], index: 2, kind: input, shape index: {}]   ;;  %s625_s4 = inlined_call_operand.vmem [shape: f32[1,128], index: 4, kind: input, shape index: {}]   ;;  %s626_s6 = inlined_call_operand.vmem [shape: f32[1,3], index: 6, kind: input, shape index: {}]   ;;  %s627_s7 = inlined_call_operand.vmem [shape: f32[8,3], index: 7, kind: output, shape index: {}]  }
   0x1   :  { %348 = vmatprep.subr.mxu0 %v425_v0  ;;  %v27_v1 = vld [vmem:[%s620_s1] sm:$0xf]  ;;  %350 = vmatprep.mubr.msk.f32.mxu0 %vm426_vm2, %v425_v0  ;;  %v129_v3 = vld [vmem:[%s622_s3 + $0x78] sm:$0xff]  ;;  %v128_v4 = vld [vmem:[%s622_s3 + $0x70] sm:$0xff]  ;;  %vm301_vm3 = vcmask 23552  }
   0x2   :  { %v26_v2 = vld [vmem:[%s621_s0] sm:$0xff]  ;;  %349 = vmatpush3.msk.msra.mxu0 %vm39_vm0, %v27_v1  ;;  %353 = vmatprep.subr.mxu1 %v425_v0  ;;  %v127_v5 = vld [vmem:[%s622_s3 + $0x68] sm:$0xff]  ;;  %v125_v7 = vld [vmem:[%s622_s3 + $0x58] sm:$0xff] }
   0x3   :  { %351 = vmatmul.mubr.msk.f32.vlgmr.msra.gmra.mxu0 %vm35_vm1, %v26_v2  ;;  %354 = vmatpush3.msra.mxu1 %v129_v3  ;;  %v126_v6 = vld [vmem:[%s622_s3 + $0x60] sm:$0xff]  ;;  %v124_v8 = vld [vmem:[%s622_s3 + $0x50] sm:$0xff]  ;;  %v123_v9 = vld [vmem:[%s622_s3 + $0x48] sm:$0xff] }
   0x4   :  { %355 = vmatprep.subr.mxu1 %v425_v0  ;;  %385 = vmatprep.mubr.msk.f32.mxu1 %vm426_vm2, %v425_v0  ;;  %v122_v10 = vld [vmem:[%s622_s3 + $0x40] sm:$0xff]  ;;  %v121_v11 = vld [vmem:[%s622_s3 + $0x38] sm:$0xff]  ;;  %v120_v12 = vld [vmem:[%s622_s3 + $0x30] sm:$0xff] }
   0x5   :  { %356 = vmatpush3.msra.mxu1 %v128_v4  ;;  %388 = vmatprep.subr.mxu0 %v425_v0  ;;  %v119_v13 = vld [vmem:[%s622_s3 + $0x28] sm:$0xff]  ;;  %v118_v14 = vld [vmem:[%s622_s3 + $0x20] sm:$0xff]  ;;  %v117_v15 = vld [vmem:[%s622_s3 + $0x18] sm:$0xff] }
   0x6   :  { %357 = vmatprep.subr.mxu1 %v425_v0  ;;  %420 = vmatprep.mubr.msk.f32.mxu0 %vm426_vm2, %v425_v0  ;;  %v116_v16 = vld [vmem:[%s622_s3 + $0x10] sm:$0xff]  ;;  %v115_v17 = vld [vmem:[%s622_s3 + $0x8] sm:$0xff]  ;;  %v114_v18 = vld [vmem:[%s622_s3] sm:$0xff] }
   0x7   :  { %358 = vmatpush3.msra.mxu1 %v127_v5  ;;  %v223_v19 = vld [vmem:[%s623_s5 + $0x78] sm:$0xff]  ;;  %v222_v20 = vld [vmem:[%s623_s5 + $0x70] sm:$0xff]  ;;  %v221_v21 = vld [vmem:[%s623_s5 + $0x68] sm:$0xff] }
   0x8   :  { %359 = vmatprep.subr.mxu1 %v425_v0  ;;  %389 = vmatpush3.msra.mxu0 %v223_v19  ;;  %v220_v22 = vld [vmem:[%s623_s5 + $0x60] sm:$0xff]  ;;  %v219_v23 = vld [vmem:[%s623_s5 + $0x58] sm:$0xff]  ;;  %v218_v24 = vld [vmem:[%s623_s5 + $0x50] sm:$0xff] }
   0x9   :  { %360 = vmatpush3.msra.mxu1 %v126_v6  ;;  %390 = vmatprep.subr.mxu0 %v425_v0  ;;  %v217_v25 = vld [vmem:[%s623_s5 + $0x48] sm:$0xff]  ;;  %v216_v26 = vld [vmem:[%s623_s5 + $0x40] sm:$0xff]  ;;  %v215_v27 = vld [vmem:[%s623_s5 + $0x38] sm:$0xff] }
   0xa   :  { %361 = vmatprep.subr.mxu1 %v425_v0  ;;  %391 = vmatpush3.msra.mxu0 %v222_v20  ;;  %v214_v28 = vld [vmem:[%s623_s5 + $0x30] sm:$0xff]  ;;  %v213_v29 = vld [vmem:[%s623_s5 + $0x28] sm:$0xff]  ;;  %v212_v30 = vld [vmem:[%s623_s5 + $0x20] sm:$0xff] }
   0xb   :  { %362 = vmatpush3.msra.mxu1 %v125_v7  ;;  %392 = vmatprep.subr.mxu0 %v425_v0  ;;  %v211_v31 = vld [vmem:[%s623_s5 + $0x18] sm:$0xff]  ;;  %v307_v32 = vld [vmem:[%s624_s2] ss:$0 sm:$0xff]  ;;  %v210_v37 = vld [vmem:[%s623_s5 + $0x10] sm:$0xff] }
   0xc   :  { %363 = vmatprep.subr.mxu1 %v425_v0  ;;  %393 = vmatpush3.msra.mxu0 %v221_v21  ;;  %v209_v38 = vld [vmem:[%s623_s5 + $0x8] sm:$0xff]  ;;  %v208_v39 = vld [vmem:[%s623_s5] sm:$0xff] }
   0xd   :  { %364 = vmatpush3.msra.mxu1 %v124_v8  ;;  %394 = vmatprep.subr.mxu0 %v425_v0  ;;  %v310_v40 = vld [vmem:[%s625_s4] ss:$0 sm:$0xff] }
   0xe   :  { %365 = vmatprep.subr.mxu1 %v425_v0  ;;  %395 = vmatpush3.msra.mxu0 %v220_v22  ;;  %v311_v45 = vld [vmem:[%s626_s6] ss:$0 sm:$0xff] }
   0xf   :  { %366 = vmatpush3.msra.mxu1 %v123_v9  ;;  %396 = vmatprep.subr.mxu0 %v425_v0 }
  0x10   :  { %367 = vmatprep.subr.mxu1 %v425_v0  ;;  %397 = vmatpush3.msra.mxu0 %v219_v23 }
  0x11   :  { %368 = vmatpush3.msra.mxu1 %v122_v10  ;;  %398 = vmatprep.subr.mxu0 %v425_v0 }
  0x12   :  { %369 = vmatprep.subr.mxu1 %v425_v0  ;;  %399 = vmatpush3.msra.mxu0 %v218_v24 }
  0x13   :  { %370 = vmatpush3.msra.mxu1 %v121_v11  ;;  %400 = vmatprep.subr.mxu0 %v425_v0 }
  0x14   :  { %371 = vmatprep.subr.mxu1 %v425_v0  ;;  %401 = vmatpush3.msra.mxu0 %v217_v25 }
  0x15   :  { %372 = vmatpush3.msra.mxu1 %v120_v12  ;;  %402 = vmatprep.subr.mxu0 %v425_v0 }
  0x16   :  { %373 = vmatprep.subr.mxu1 %v425_v0  ;;  %403 = vmatpush3.msra.mxu0 %v216_v26 }
  0x17   :  { %374 = vmatpush3.msra.mxu1 %v119_v13  ;;  %404 = vmatprep.subr.mxu0 %v425_v0 }
  0x18   :  { %375 = vmatprep.subr.mxu1 %v425_v0  ;;  %405 = vmatpush3.msra.mxu0 %v215_v27 }
  0x19   :  { %376 = vmatpush3.msra.mxu1 %v118_v14  ;;  %406 = vmatprep.subr.mxu0 %v425_v0 }
  0x1a   :  { %377 = vmatprep.subr.mxu1 %v425_v0  ;;  %407 = vmatpush3.msra.mxu0 %v214_v28 }
  0x1b   :  { %378 = vmatpush3.msra.mxu1 %v117_v15  ;;  %408 = vmatprep.subr.mxu0 %v425_v0 }
  0x1c   :  { %379 = vmatprep.subr.mxu1 %v425_v0  ;;  %409 = vmatpush3.msra.mxu0 %v213_v29 }
  0x1d   :  { %380 = vmatpush3.msra.mxu1 %v116_v16  ;;  %410 = vmatprep.subr.mxu0 %v425_v0 }
  0x1e   :  { %381 = vmatprep.subr.mxu1 %v425_v0  ;;  %411 = vmatpush3.msra.mxu0 %v212_v30 }
  0x1f   :  { %382 = vmatpush3.msra.mxu1 %v115_v17  ;;  %412 = vmatprep.subr.mxu0 %v425_v0 }
  0x20   :  { %383 = vmatprep.subr.mxu1 %v425_v0  ;;  %413 = vmatpush3.msra.mxu0 %v211_v31 }
  0x21   :  { %384 = vmatpush3.msra.mxu1 %v114_v18  ;;  %414 = vmatprep.subr.mxu0 %v425_v0 }
  0x22   :  { %415 = vmatpush3.msra.mxu0 %v210_v37 }
  0x23   :  { %416 = vmatprep.subr.mxu0 %v425_v0 }
  0x24   :  { %417 = vmatpush3.msra.mxu0 %v209_v38 }
  0x25   :  { %418 = vmatprep.subr.mxu0 %v425_v0 }
  0x26   :  { %419 = vmatpush3.msra.mxu0 %v208_v39 }
  0xc3   :  { %v109_v33 = vpop.f32.mrf.mxu0 }
  0xc4   :  { %v110_v34 = vadd.f32 %v307_v32, %v109_v33 }
  0xc5   :  { %v352_v35 = vpop.f32.mrf.mxu0 }
  0xc6   :  { %v113_v36 = vmax.f32 %v110_v34, 0.0 }
  0xc8   :  { %386 = vmatmul.mubr.f32.vlgmr.msra.gmra.mxu1 %v113_v36 }
 0x188   :  { %v203_v41 = vpop.f32.mrf.mxu1 }
 0x189   :  { %v204_v42 = vadd.f32 %v310_v40, %v203_v41 }
 0x18a   :  { %v387_v43 = vpop.f32.mrf.mxu1 }
 0x18b   :  { %v207_v44 = vmax.f32 %v204_v42, 0.0 }
 0x18d   :  { %421 = vmatmul.mubr.f32.vlgmr.msra.gmra.mxu0 %v207_v44 }
 0x24d   :  { %v297_v46 = vpop.f32.mrf.mxu0 }
 0x24e   :  { %v298_v47 = vadd.f32 %v311_v45, %v297_v46 }
 0x24f   :  { %v422_v48 = vpop.f32.mrf.mxu0 }
 0x250   :  { %302 = vst.msk [vmem:[%s627_s7] sm:$0xff] %vm301_vm3, %v298_v47 }

</bundles_post_ra>
